<compile_context>
chip_gen: v7x
topology: tpu7x:2x2x1
jax: 0.10.0
libtpu: 0.0.40
codegen_flags: <defaults>
</compile_context>

<pallas_src>
import functools

import jax
import jax.numpy as jnp
from jax.experimental import pallas as pl
from jax.experimental.pallas import tpu as pltpu

IN_RAW = 28 * 28          # 784
IN_PAD = 896              # 7 * 128 (lane-aligned K for fc1)
H1 = 256
H2 = 128
OUT_RAW = 10
OUT_PAD = 128             # lane-dense output (unmasked stores); sliced back to 10 in wrapper


def mlp_kernel(x_ref, w1_ref, b1_ref, w2_ref, b2_ref, w3_ref, b3_ref, o_ref):
    # x_ref: (TB, 896) bf16 ; weights bf16 ; biases f32 (1, N) ; o_ref: (TB, 128) f32
    x = x_ref[...]

    # fc1 + ReLU: MXU matmul in bf16 with f32 accumulation; bias/ReLU on the VPU in f32.
    h1 = jnp.dot(x, w1_ref[...], preferred_element_type=jnp.float32) + b1_ref[...]
    h1 = jnp.maximum(h1, 0.0)

    # fc2 + ReLU
    h2 = jnp.dot(h1.astype(jnp.bfloat16), w2_ref[...],
                 preferred_element_type=jnp.float32) + b2_ref[...]
    h2 = jnp.maximum(h2, 0.0)

    # fc3 (output padded to 128 lanes; padded columns are exactly zero)
    o_ref[...] = jnp.dot(h2.astype(jnp.bfloat16), w3_ref[...],
                         preferred_element_type=jnp.float32) + b3_ref[...]


@functools.partial(jax.jit, static_argnames=("tb",))
def mlp_forward(x, params, *, tb=512):
    """x: (B, 784) f32. params: (w1,b1,w2,b2,w3,b3) with weights stored [in, out]."""
    w1, b1, w2, b2, w3, b3 = params
    B = x.shape[0]

    # ----- host-side layout prep (padding + bf16 casts) -----
    # batch tile: multiple of 8 sublanes, capped at `tb`
    TB = min(tb, max(8, ((B + 7) // 8) * 8))
    Bp = pl.cdiv(B, TB) * TB

    x_p = jnp.zeros((Bp, IN_PAD), jnp.bfloat16)
    x_p = x_p.at[:B, :IN_RAW].set(x.astype(jnp.bfloat16))

    w1_p = jnp.zeros((IN_PAD, H1), jnp.bfloat16).at[:IN_RAW, :].set(w1.astype(jnp.bfloat16))
    w2_b = w2.astype(jnp.bfloat16)
    w3_p = jnp.zeros((H2, OUT_PAD), jnp.bfloat16).at[:, :OUT_RAW].set(w3.astype(jnp.bfloat16))

    b1_f = b1.reshape(1, H1).astype(jnp.float32)
    b2_f = b2.reshape(1, H2).astype(jnp.float32)
    b3_p = jnp.zeros((1, OUT_PAD), jnp.float32).at[:, :OUT_RAW].set(
        b3.reshape(1, OUT_RAW).astype(jnp.float32))

    grid = (Bp // TB,)

    flops = 2 * Bp * (IN_PAD * H1 + H1 * H2 + H2 * OUT_PAD)
    bytes_accessed = (
        x_p.size * 2                                  # bf16 activations in
        + (w1_p.size + w2_b.size + w3_p.size) * 2     # bf16 weights (fetched once)
        + (b1_f.size + b2_f.size + b3_p.size) * 4     # f32 biases
        + Bp * OUT_PAD * 4                            # f32 output
    )

    out_padded = pl.pallas_call(
        mlp_kernel,
        out_shape=jax.ShapeDtypeStruct((Bp, OUT_PAD), jnp.float32),
        grid_spec=pltpu.PrefetchScalarGridSpec(
            num_scalar_prefetch=0,
            grid=grid,
            in_specs=[
                pl.BlockSpec((TB, IN_PAD), lambda i: (i, 0)),   # x tile (pipelined)
                pl.BlockSpec((IN_PAD, H1), lambda i: (0, 0)),   # w1 (resident)
                pl.BlockSpec((1, H1), lambda i: (0, 0)),        # b1 (resident)
                pl.BlockSpec((H1, H2), lambda i: (0, 0)),       # w2 (resident)
                pl.BlockSpec((1, H2), lambda i: (0, 0)),        # b2 (resident)
                pl.BlockSpec((H2, OUT_PAD), lambda i: (0, 0)),  # w3 (resident)
                pl.BlockSpec((1, OUT_PAD), lambda i: (0, 0)),   # b3 (resident)
            ],
            out_specs=pl.BlockSpec((TB, OUT_PAD), lambda i: (i, 0)),
        ),
        compiler_params=pltpu.CompilerParams(
            dimension_semantics=("parallel",),
        ),
        cost_estimate=pl.CostEstimate(
            flops=flops, transcendentals=0, bytes_accessed=bytes_accessed),
    )(x_p, w1_p, b1_f, w2_b, b2_f, w3_p, b3_p)

    return out_padded[:B, :OUT_RAW]


def init_params(key):
    # Deterministic synthetic init mimicking nn.Linear's uniform(-1/sqrt(in), 1/sqrt(in)).
    # Weights stored [in_features, out_features] (transpose of PyTorch) so y = x @ W + b.
    def linear(k, fan_in, fan_out):
        kw, kb = jax.random.split(k)
        bound = 1.0 / jnp.sqrt(fan_in)
        w = jax.random.uniform(kw, (fan_in, fan_out), jnp.float32, -bound, bound)
        b = jax.random.uniform(kb, (1, fan_out), jnp.float32, -bound, bound)
        return w, b

    k1, k2, k3 = jax.random.split(key, 3)
    w1, b1 = linear(k1, IN_RAW, H1)
    w2, b2 = linear(k2, H1, H2)
    w3, b3 = linear(k3, H2, OUT_RAW)
    return (w1, b1, w2, b2, w3, b3)


def reference_forward(x, params):
    # Reference with the same bf16 matmul-input / f32-accumulation numerics as the kernel.
    w1, b1, w2, b2, w3, b3 = params
    xb = x.astype(jnp.bfloat16)
    h1 = jnp.dot(xb, w1.astype(jnp.bfloat16), preferred_element_type=jnp.float32) + b1
    h1 = jnp.maximum(h1, 0.0)
    h2 = jnp.dot(h1.astype(jnp.bfloat16), w2.astype(jnp.bfloat16),
                 preferred_element_type=jnp.float32) + b2
    h2 = jnp.maximum(h2, 0.0)
    return jnp.dot(h2.astype(jnp.bfloat16), w3.astype(jnp.bfloat16),
                   preferred_element_type=jnp.float32) + b3


if __name__ == "__main__":
    key = jax.random.PRNGKey(0)
    kx, kp = jax.random.split(key)
    B = 8  # small test batch (kernel also handles large B via the batch grid)
    x = jax.random.normal(kx, (B, IN_RAW), jnp.float32)
    params = init_params(kp)

    out = mlp_forward(x, params)
    jax.block_until_ready(out)

    ref_bf16 = reference_forward(x, params)
    ref_f32 = jnp.maximum(
        jnp.maximum(x @ params[0] + params[1], 0.0) @ params[2] + params[3], 0.0
    ) @ params[4] + params[5]

    assert out.shape == (B, OUT_RAW)
    assert jnp.allclose(out, ref_bf16, atol=2e-3, rtol=2e-3), "mismatch vs bf16 reference"
    assert jnp.allclose(out, ref_f32, atol=5e-2, rtol=5e-2), "mismatch vs f32 reference"
    print("KERNEL_OK")
</pallas_src>

<mosaic_0001>
module attributes {stable_mosaic.version = 11 : i64} {
  func.func @mlp_kernel(%arg0: i32, %arg1: memref<8x896xbf16, #tpu.memory_space<vmem>>, %arg2: memref<896x256xbf16, #tpu.memory_space<vmem>>, %arg3: memref<1x256xf32, #tpu.memory_space<vmem>>, %arg4: memref<256x128xbf16, #tpu.memory_space<vmem>>, %arg5: memref<1x128xf32, #tpu.memory_space<vmem>>, %arg6: memref<128x128xbf16, #tpu.memory_space<vmem>>, %arg7: memref<1x128xf32, #tpu.memory_space<vmem>>, %arg8: memref<8x128xf32, #tpu.memory_space<vmem>>) attributes {dimension_semantics = [#tpu.dimension_semantics<parallel>], iteration_bounds = array<i64: 1>, scalar_prefetch = 0 : i64, scratch_operands = 0 : i64, tpu.core_type = #tpu.core_type<tc>, window_params = [{transform_indices = @transform_0, window_bounds = array<i64: 8, 896>}, {pipeline_mode = #tpu.pipeline_mode<synchronous>, transform_indices = @transform_1, window_bounds = array<i64: 896, 256>}, {pipeline_mode = #tpu.pipeline_mode<synchronous>, transform_indices = @transform_2, window_bounds = array<i64: 1, 256>}, {pipeline_mode = #tpu.pipeline_mode<synchronous>, transform_indices = @transform_3, window_bounds = array<i64: 256, 128>}, {pipeline_mode = #tpu.pipeline_mode<synchronous>, transform_indices = @transform_4, window_bounds = array<i64: 1, 128>}, {pipeline_mode = #tpu.pipeline_mode<synchronous>, transform_indices = @transform_5, window_bounds = array<i64: 128, 128>}, {pipeline_mode = #tpu.pipeline_mode<synchronous>, transform_indices = @transform_6, window_bounds = array<i64: 1, 128>}, {transform_indices = @transform_7, window_bounds = array<i64: 8, 128>}]} {
    %c0 = arith.constant 0 : index
    %c0_0 = arith.constant 0 : index
    %0 = vector.load %arg1[%c0, %c0_0] : memref<8x896xbf16, #tpu.memory_space<vmem>>, vector<8x896xbf16>
    %c0_1 = arith.constant 0 : index
    %c0_2 = arith.constant 0 : index
    %1 = vector.load %arg2[%c0_1, %c0_2] : memref<896x256xbf16, #tpu.memory_space<vmem>>, vector<896x256xbf16>
    %cst = arith.constant dense<0.000000e+00> : vector<8x256xf32>
    %2 = tpu.matmul %0, %1, %cst {dimension_numbers = #tpu.dot_dimension_numbers<[1], [0], [0], [1], [0, 0, 1, 1], [], []>} : vector<8x896xbf16>, vector<896x256xbf16>, vector<8x256xf32> -> vector<8x256xf32>
    %c0_3 = arith.constant 0 : index
    %c0_4 = arith.constant 0 : index
    %3 = vector.load %arg3[%c0_3, %c0_4] : memref<1x256xf32, #tpu.memory_space<vmem>>, vector<1x256xf32>
    %4 = vector.broadcast %3 : vector<1x256xf32> to vector<8x256xf32>
    %5 = arith.addf %2, %4 : vector<8x256xf32>
    %cst_5 = arith.constant 0.000000e+00 : f32
    %6 = vector.broadcast %cst_5 : f32 to vector<8x256xf32>
    %7 = arith.maximumf %5, %6 : vector<8x256xf32>
    %8 = arith.truncf %7 : vector<8x256xf32> to vector<8x256xbf16>
    %c0_6 = arith.constant 0 : index
    %c0_7 = arith.constant 0 : index
    %9 = vector.load %arg4[%c0_6, %c0_7] : memref<256x128xbf16, #tpu.memory_space<vmem>>, vector<256x128xbf16>
    %cst_8 = arith.constant dense<0.000000e+00> : vector<8x128xf32>
    %10 = tpu.matmul %8, %9, %cst_8 {dimension_numbers = #tpu.dot_dimension_numbers<[1], [0], [0], [1], [0, 0, 1, 1], [], []>} : vector<8x256xbf16>, vector<256x128xbf16>, vector<8x128xf32> -> vector<8x128xf32>
    %c0_9 = arith.constant 0 : index
    %c0_10 = arith.constant 0 : index
    %11 = vector.load %arg5[%c0_9, %c0_10] : memref<1x128xf32, #tpu.memory_space<vmem>>, vector<1x128xf32>
    %12 = vector.broadcast %11 : vector<1x128xf32> to vector<8x128xf32>
    %13 = arith.addf %10, %12 : vector<8x128xf32>
    %cst_11 = arith.constant 0.000000e+00 : f32
    %14 = vector.broadcast %cst_11 : f32 to vector<8x128xf32>
    %15 = arith.maximumf %13, %14 : vector<8x128xf32>
    %16 = arith.truncf %15 : vector<8x128xf32> to vector<8x128xbf16>
    %c0_12 = arith.constant 0 : index
    %c0_13 = arith.constant 0 : index
    %17 = vector.load %arg6[%c0_12, %c0_13] : memref<128x128xbf16, #tpu.memory_space<vmem>>, vector<128x128xbf16>
    %cst_14 = arith.constant dense<0.000000e+00> : vector<8x128xf32>
    %18 = tpu.matmul %16, %17, %cst_14 {dimension_numbers = #tpu.dot_dimension_numbers<[1], [0], [0], [1], [0, 0, 1, 1], [], []>} : vector<8x128xbf16>, vector<128x128xbf16>, vector<8x128xf32> -> vector<8x128xf32>
    %c0_15 = arith.constant 0 : index
    %c0_16 = arith.constant 0 : index
    %19 = vector.load %arg7[%c0_15, %c0_16] : memref<1x128xf32, #tpu.memory_space<vmem>>, vector<1x128xf32>
    %20 = vector.broadcast %19 : vector<1x128xf32> to vector<8x128xf32>
    %21 = arith.addf %18, %20 : vector<8x128xf32>
    %c0_17 = arith.constant 0 : index
    %c0_18 = arith.constant 0 : index
    %22 = vector.load %arg8[%c0_17, %c0_18] : memref<8x128xf32, #tpu.memory_space<vmem>>, vector<8x128xf32>
    tpu.vector_store %arg8[%c0_17, %c0_18], %21 {strides = array<i32>} : memref<8x128xf32, #tpu.memory_space<vmem>>, vector<8x128xf32>,
    return
  }
  func.func @transform_0(%arg0: i32) -> (i32, i32) {
    %c0_i32 = arith.constant 0 : i32
    %c0_i32_0 = arith.constant 0 : i32
    return %arg0, %c0_i32 : i32, i32
  }
  func.func @transform_1(%arg0: i32) -> (i32, i32) {
    %c0_i32 = arith.constant 0 : i32
    %c0_i32_0 = arith.constant 0 : i32
    %c0_i32_1 = arith.constant 0 : i32
    return %c0_i32, %c0_i32_0 : i32, i32
  }
  func.func @transform_2(%arg0: i32) -> (i32, i32) {
    %c0_i32 = arith.constant 0 : i32
    %c0_i32_0 = arith.constant 0 : i32
    %c0_i32_1 = arith.constant 0 : i32
    return %c0_i32, %c0_i32_0 : i32, i32
  }
  func.func @transform_3(%arg0: i32) -> (i32, i32) {
    %c0_i32 = arith.constant 0 : i32
    %c0_i32_0 = arith.constant 0 : i32
    %c0_i32_1 = arith.constant 0 : i32
    return %c0_i32, %c0_i32_0 : i32, i32
  }
  func.func @transform_4(%arg0: i32) -> (i32, i32) {
    %c0_i32 = arith.constant 0 : i32
    %c0_i32_0 = arith.constant 0 : i32
    %c0_i32_1 = arith.constant 0 : i32
    return %c0_i32, %c0_i32_0 : i32, i32
  }
  func.func @transform_5(%arg0: i32) -> (i32, i32) {
    %c0_i32 = arith.constant 0 : i32
    %c0_i32_0 = arith.constant 0 : i32
    %c0_i32_1 = arith.constant 0 : i32
    return %c0_i32, %c0_i32_0 : i32, i32
  }
  func.func @transform_6(%arg0: i32) -> (i32, i32) {
    %c0_i32 = arith.constant 0 : i32
    %c0_i32_0 = arith.constant 0 : i32
    %c0_i32_1 = arith.constant 0 : i32
    return %c0_i32, %c0_i32_0 : i32, i32
  }
  func.func @transform_7(%arg0: i32) -> (i32, i32) {
    %c0_i32 = arith.constant 0 : i32
    %c0_i32_0 = arith.constant 0 : i32
    return %arg0, %c0_i32 : i32, i32
  }
}

</mosaic_0001>

<bundles_post_ra>
// kernel: mlp_forward.1
= control target key start
LH: loop header
LB: loop body
LE: loop exit
PB: predicated region body
PF: predicated region fallthrough
CT: control target
= control target key end

     0   :  { %s2144_s0 = inlined_call_operand.vmem [shape: bf16[8,896], index: 0, kind: input, shape index: {}]   ;;  %s2145_s1 = inlined_call_operand.vmem [shape: bf16[896,256], index: 1, kind: input, shape index: {}]   ;;  %s2146_s2 = inlined_call_operand.vmem [shape: f32[1,256], index: 2, kind: input, shape index: {}]   ;;  %s2147_s3 = inlined_call_operand.vmem [shape: bf16[256,128], index: 3, kind: input, shape index: {}]   ;;  %s2148_s4 = inlined_call_operand.vmem [shape: f32[1,128], index: 4, kind: input, shape index: {}]   ;;  %s2149_s5 = inlined_call_operand.vmem [shape: bf16[128,128], index: 5, kind: input, shape index: {}]   ;;  %s2150_s6 = inlined_call_operand.vmem [shape: f32[1,128], index: 6, kind: input, shape index: {}]   ;;  %s2151_s7 = inlined_call_operand.hbm [shape: f32[8,128], index: 7, kind: output, shape index: {}]  }
   0x1   :  { %v1424_v0 = vld [vmem:[%s2145_s1 + $0x104] ss:$8 sps:$4 sm:$0xff]   ;;  %v1426_v1 = vld [vmem:[%s2145_s1 + $0x100] ss:$8 sps:$4 sm:$0xff]   ;;  %v1427_v2 = vld [vmem:[%s2145_s1 + $0x114] ss:$8 sps:$4 sm:$0xff]  }
   0x2   :  { %782 = vmatprep.subr.bf16.mxu0 %v1424_v0  ;;  %v1429_v3 = vld [vmem:[%s2145_s1 + $0x110] ss:$8 sps:$4 sm:$0xff]   ;;  %v1430_v4 = vld [vmem:[%s2145_s1 + $0x124] ss:$8 sps:$4 sm:$0xff]   ;;  %v1432_v5 = vld [vmem:[%s2145_s1 + $0x120] ss:$8 sps:$4 sm:$0xff]  }
   0x3   :  { %783 = vmatpush1.bf16.msra.mxu0 %v1426_v1  ;;  %v1433_v6 = vld [vmem:[%s2145_s1 + $0x134] ss:$8 sps:$4 sm:$0xff]   ;;  %v1435_v7 = vld [vmem:[%s2145_s1 + $0x130] ss:$8 sps:$4 sm:$0xff]   ;;  %v1436_v8 = vld [vmem:[%s2145_s1 + $0x144] ss:$8 sps:$4 sm:$0xff]  }
   0x4   :  { %784 = vmatprep.subr.bf16.mxu0 %v1427_v2  ;;  %v1438_v9 = vld [vmem:[%s2145_s1 + $0x140] ss:$8 sps:$4 sm:$0xff]   ;;  %v1439_v10 = vld [vmem:[%s2145_s1 + $0x154] ss:$8 sps:$4 sm:$0xff]   ;;  %v1441_v11 = vld [vmem:[%s2145_s1 + $0x150] ss:$8 sps:$4 sm:$0xff]  }
   0x5   :  { %v1442_v12 = vld [vmem:[%s2145_s1 + $0x164] ss:$8 sps:$4 sm:$0xff]   ;;  %v1444_v15 = vld [vmem:[%s2145_s1 + $0x160] ss:$8 sps:$4 sm:$0xff]   ;;  %v1445_v16 = vld [vmem:[%s2145_s1 + $0x174] ss:$8 sps:$4 sm:$0xff]  }
   0x6   :  { %v1733_v13 = vld [vmem:[%s2144_s0 + $0x8] sm:$0xff]  ;;  %v1447_v17 = vld [vmem:[%s2145_s1 + $0x170] ss:$8 sps:$4 sm:$0xff]   ;;  %v1451_v20 = vld [vmem:[%s2145_s1 + $0x194] ss:$8 sps:$4 sm:$0xff]  }
   0x7   :  { %785 = vmatpush1.bf16.msra.mxu0 %v1429_v3  ;;  %v1215_v14 = vcombine.high %v1733_v13, %v1733_v13  ;;  %v1448_v18 = vld [vmem:[%s2145_s1 + $0x184] ss:$8 sps:$4 sm:$0xff]   ;;  %v1450_v19 = vld [vmem:[%s2145_s1 + $0x180] ss:$8 sps:$4 sm:$0xff]   ;;  %v1501_v23 = vld [vmem:[%s2145_s1 + $0x14] ss:$8 sps:$4 sm:$0xff]   ;;  %v1214_v54 = vcombine.low %v1733_v13, %v1733_v13 }
   0x8   :  { %786 = vmatprep.subr.bf16.mxu0 %v1430_v4  ;;  %v1495_v21 = vld [vmem:[%s2145_s1 + $0x4] ss:$8 sps:$4 sm:$0xff]   ;;  %v1497_v22 = vld [vmem:[%s2145_s1] ss:$8 sps:$4 sm:$0xff]   ;;  %v1503_v24 = vld [vmem:[%s2145_s1 + $0x10] ss:$8 sps:$4 sm:$0xff]  }
   0x9   :  { %814 = vmatprep.mubr.bf16.mxu0 %v1215_v14  ;;  %741 = vmatprep.subr.bf16.mxu1 %v1495_v21  ;;  %v1453_v25 = vld [vmem:[%s2145_s1 + $0x190] ss:$8 sps:$4 sm:$0xff]   ;;  %v1454_v26 = vld [vmem:[%s2145_s1 + $0x1a4] ss:$8 sps:$4 sm:$0xff]   ;;  %v1456_v28 = vld [vmem:[%s2145_s1 + $0x1a0] ss:$8 sps:$4 sm:$0xff]  }
   0xa   :  { %742 = vmatpush1.bf16.msra.mxu1 %v1497_v22  ;;  %v1507_v27 = vld [vmem:[%s2145_s1 + $0x24] ss:$8 sps:$4 sm:$0xff]   ;;  %v1509_v29 = vld [vmem:[%s2145_s1 + $0x20] ss:$8 sps:$4 sm:$0xff]   ;;  %v1513_v30 = vld [vmem:[%s2145_s1 + $0x34] ss:$8 sps:$4 sm:$0xff]  }
   0xb   :  { %787 = vmatpush1.bf16.msra.mxu0 %v1432_v5  ;;  %743 = vmatprep.subr.bf16.mxu1 %v1501_v23  ;;  %v1457_v31 = vld [vmem:[%s2145_s1 + $0x1b4] ss:$8 sps:$4 sm:$0xff]   ;;  %v1459_v32 = vld [vmem:[%s2145_s1 + $0x1b0] ss:$8 sps:$4 sm:$0xff]   ;;  %v1519_v34 = vld [vmem:[%s2145_s1 + $0x44] ss:$8 sps:$4 sm:$0xff]  }
   0xc   :  { %788 = vmatprep.subr.bf16.mxu0 %v1433_v6  ;;  %v1515_v33 = vld [vmem:[%s2145_s1 + $0x30] ss:$8 sps:$4 sm:$0xff]   ;;  %v1460_v35 = vld [vmem:[%s2145_s1 + $0x1c4] ss:$8 sps:$4 sm:$0xff]   ;;  %v1462_v36 = vld [vmem:[%s2145_s1 + $0x1c0] ss:$8 sps:$4 sm:$0xff]  }
   0xd   :  { %v1521_v37 = vld [vmem:[%s2145_s1 + $0x40] ss:$8 sps:$4 sm:$0xff]   ;;  %v1525_v38 = vld [vmem:[%s2145_s1 + $0x54] ss:$8 sps:$4 sm:$0xff]   ;;  %v1465_v40 = vld [vmem:[%s2145_s1 + $0x1d0] ss:$8 sps:$4 sm:$0xff]  }
   0xe   :  { %744 = vmatpush1.bf16.msra.mxu1 %v1503_v24  ;;  %v1463_v39 = vld [vmem:[%s2145_s1 + $0x1d4] ss:$8 sps:$4 sm:$0xff]   ;;  %v1527_v41 = vld [vmem:[%s2145_s1 + $0x50] ss:$8 sps:$4 sm:$0xff]   ;;  %v1531_v42 = vld [vmem:[%s2145_s1 + $0x64] ss:$8 sps:$4 sm:$0xff]  }
   0xf   :  { %789 = vmatpush1.bf16.msra.mxu0 %v1435_v7  ;;  %745 = vmatprep.subr.bf16.mxu1 %v1507_v27  ;;  %v1466_v43 = vld [vmem:[%s2145_s1 + $0x1e4] ss:$8 sps:$4 sm:$0xff]   ;;  %v1468_v44 = vld [vmem:[%s2145_s1 + $0x1e0] ss:$8 sps:$4 sm:$0xff]   ;;  %v1537_v46 = vld [vmem:[%s2145_s1 + $0x74] ss:$8 sps:$4 sm:$0xff]  }
  0x10   :  { %790 = vmatprep.subr.bf16.mxu0 %v1436_v8  ;;  %v1533_v45 = vld [vmem:[%s2145_s1 + $0x60] ss:$8 sps:$4 sm:$0xff]   ;;  %v1469_v47 = vld [vmem:[%s2145_s1 + $0x1f4] ss:$8 sps:$4 sm:$0xff]   ;;  %v1471_v48 = vld [vmem:[%s2145_s1 + $0x1f0] ss:$8 sps:$4 sm:$0xff]  }
  0x11   :  { %v1539_v49 = vld [vmem:[%s2145_s1 + $0x70] ss:$8 sps:$4 sm:$0xff]   ;;  %v1543_v50 = vld [vmem:[%s2145_s1 + $0x84] ss:$8 sps:$4 sm:$0xff]   ;;  %v1474_v52 = vld [vmem:[%s2145_s1 + $0x200] ss:$8 sps:$4 sm:$0xff]  }
  0x12   :  { %746 = vmatpush1.bf16.msra.mxu1 %v1509_v29  ;;  %v1476_v51 = vld [vmem:[%s2145_s1 + $0x204] ss:$8 sps:$4 sm:$0xff]   ;;  %v1854_v53 = vld [vmem:[%s2144_s0 + $0x10] sm:$0xff]  ;;  %v1545_v55 = vld [vmem:[%s2145_s1 + $0x80] ss:$8 sps:$4 sm:$0xff]  }
  0x13   :  { %791 = vmatpush1.bf16.msra.mxu0 %v1438_v9  ;;  %747 = vmatprep.subr.bf16.mxu1 %v1513_v30  ;;  %v1549_v56 = vld [vmem:[%s2145_s1 + $0x94] ss:$8 sps:$4 sm:$0xff]   ;;  %v1217_v58 = vcombine.high %v1854_v53, %v1854_v53  ;;  %v1477_v59 = vld [vmem:[%s2145_s1 + $0x210] ss:$8 sps:$4 sm:$0xff]   ;;  %v1557_v61 = vld [vmem:[%s2145_s1 + $0xa4] ss:$8 sps:$4 sm:$0xff]  }
  0x14   :  { %792 = vmatprep.subr.bf16.mxu0 %v1439_v10  ;;  %v1479_v57 = vld [vmem:[%s2145_s1 + $0x214] ss:$8 sps:$4 sm:$0xff]   ;;  %v1551_v60 = vld [vmem:[%s2145_s1 + $0x90] ss:$8 sps:$4 sm:$0xff]   ;;  %v1482_v62 = vld [vmem:[%s2145_s1 + $0x224] ss:$8 sps:$4 sm:$0xff]  }
  0x15   :  { %v1480_v63 = vld [vmem:[%s2145_s1 + $0x220] ss:$8 sps:$4 sm:$0xff]   ;;  %v1563_v1 = vld [vmem:[%s2145_s1 + $0xb4] ss:$8 sps:$4 sm:$0xff]   ;;  %v1565_v3 = vld [vmem:[%s2145_s1 + $0xb0] ss:$8 sps:$4 sm:$0xff]  }
  0x16   :  { %748 = vmatpush1.bf16.msra.mxu1 %v1515_v33  ;;  %v1559_v0 = vld [vmem:[%s2145_s1 + $0xa0] ss:$8 sps:$4 sm:$0xff]   ;;  %v1485_v2 = vld [vmem:[%s2145_s1 + $0x234] ss:$8 sps:$4 sm:$0xff]   ;;  %v1483_v5 = vld [vmem:[%s2145_s1 + $0x230] ss:$8 sps:$4 sm:$0xff]  }
  0x17   :  { %793 = vmatpush1.bf16.msra.mxu0 %v1441_v11  ;;  %749 = vmatprep.subr.bf16.mxu1 %v1519_v34  ;;  %v28_v4 = vld [vmem:[%s2144_s0] sm:$0xff]  ;;  %v1575_v11 = vld [vmem:[%s2145_s1 + $0xd4] ss:$8 sps:$4 sm:$0xff]   ;;  %v1489_v13 = vld [vmem:[%s2145_s1 + $0x250] ss:$8 sps:$4 sm:$0xff]  }
  0x18   :  { %794 = vmatprep.subr.bf16.mxu0 %v1442_v12  ;;  %v1569_v6 = vld [vmem:[%s2145_s1 + $0xc4] ss:$8 sps:$4 sm:$0xff]   ;;  %v1213_v7 = vcombine.high %v28_v4, %v28_v4  ;;  %v1486_v9 = vld [vmem:[%s2145_s1 + $0x240] ss:$8 sps:$4 sm:$0xff]   ;;  %v1491_v12 = vld [vmem:[%s2145_s1 + $0x254] ss:$8 sps:$4 sm:$0xff]   ;;  %v1212_v27 = vcombine.low %v28_v4, %v28_v4 }
  0x19   :  { %v1488_v8 = vld [vmem:[%s2145_s1 + $0x244] ss:$8 sps:$4 sm:$0xff]   ;;  %v1571_v10 = vld [vmem:[%s2145_s1 + $0xc0] ss:$8 sps:$4 sm:$0xff]   ;;  %v1577_v14 = vld [vmem:[%s2145_s1 + $0xd0] ss:$8 sps:$4 sm:$0xff]  }
  0x1a   :  { %750 = vmatpush1.bf16.msra.mxu1 %v1521_v37  ;;  %773 = vmatprep.mubr.bf16.mxu1 %v1213_v7  ;;  %v1589_v21 = vld [vmem:[%s2145_s1 + $0xf0] ss:$8 sps:$4 sm:$0xff]   ;;  %v1599_v23 = vld [vmem:[%s2147_s3 + $0x40] sm:$0xff]   ;;  %v1512_v29 = vld [vmem:[%s2145_s1 + $0x294] ss:$8 sps:$4 sm:$0xff]  }
  0x1b   :  { %795 = vmatpush1.bf16.msra.mxu0 %v1444_v15  ;;  %751 = vmatprep.subr.bf16.mxu1 %v1525_v38  ;;  %v1581_v15 = vld [vmem:[%s2145_s1 + $0xe4] ss:$8 sps:$4 sm:$0xff]   ;;  %v1498_v22 = vld [vmem:[%s2145_s1 + $0x270] ss:$8 sps:$4 sm:$0xff]  }
  0x1c   :  { %796 = vmatprep.subr.bf16.mxu0 %v1445_v16  ;;  %v1494_v16 = vld [vmem:[%s2145_s1 + $0x264] ss:$8 sps:$4 sm:$0xff]  }
  0x1d   :  { %v1506_v24 = vld [vmem:[%s2145_s1 + $0x284] ss:$8 sps:$4 sm:$0xff]  }
  0x1e   :  { %752 = vmatpush1.bf16.msra.mxu1 %v1527_v41 }
  0x1f   :  { %797 = vmatpush1.bf16.msra.mxu0 %v1447_v17  ;;  %753 = vmatprep.subr.bf16.mxu1 %v1531_v42  ;;  %v1492_v17 = vld [vmem:[%s2145_s1 + $0x260] ss:$8 sps:$4 sm:$0xff]  }
  0x20   :  { %798 = vmatprep.subr.bf16.mxu0 %v1448_v18  ;;  %v1500_v18 = vld [vmem:[%s2145_s1 + $0x274] ss:$8 sps:$4 sm:$0xff]  }
  0x22   :  { %754 = vmatpush1.bf16.msra.mxu1 %v1533_v45 }
  0x23   :  { %799 = vmatpush1.bf16.msra.mxu0 %v1450_v19  ;;  %755 = vmatprep.subr.bf16.mxu1 %v1537_v46  ;;  %v1583_v19 = vld [vmem:[%s2145_s1 + $0xe0] ss:$8 sps:$4 sm:$0xff]  }
  0x24   :  { %800 = vmatprep.subr.bf16.mxu0 %v1451_v20  ;;  %v1587_v20 = vld [vmem:[%s2145_s1 + $0xf4] ss:$8 sps:$4 sm:$0xff]  }
  0x26   :  { %756 = vmatpush1.bf16.msra.mxu1 %v1539_v49 }
  0x27   :  { %801 = vmatpush1.bf16.msra.mxu0 %v1453_v25  ;;  %757 = vmatprep.subr.bf16.mxu1 %v1543_v50  ;;  %v1600_v25 = vld [vmem:[%s2147_s3] sm:$0xff]  }
  0x28   :  { %802 = vmatprep.subr.bf16.mxu0 %v1454_v26  ;;  %v1504_v26 = vld [vmem:[%s2145_s1 + $0x280] ss:$8 sps:$4 sm:$0xff]  }
  0x2a   :  { %758 = vmatpush1.bf16.msra.mxu1 %v1545_v55 }
  0x2b   :  { %803 = vmatpush1.bf16.msra.mxu0 %v1456_v28  ;;  %759 = vmatprep.subr.bf16.mxu1 %v1549_v56  ;;  %v1601_v28 = vld [vmem:[%s2147_s3 + $0x48] sm:$0xff]  }
  0x2c   :  { %804 = vmatprep.subr.bf16.mxu0 %v1457_v31 }
  0x2e   :  { %760 = vmatpush1.bf16.msra.mxu1 %v1551_v60 }
  0x2f   :  { %805 = vmatpush1.bf16.msra.mxu0 %v1459_v32  ;;  %761 = vmatprep.subr.bf16.mxu1 %v1557_v61 }
  0x30   :  { %806 = vmatprep.subr.bf16.mxu0 %v1460_v35 }
  0x32   :  { %762 = vmatpush1.bf16.msra.mxu1 %v1559_v0 }
  0x33   :  { %807 = vmatpush1.bf16.msra.mxu0 %v1462_v36  ;;  %763 = vmatprep.subr.bf16.mxu1 %v1563_v1 }
  0x34   :  { %808 = vmatprep.subr.bf16.mxu0 %v1463_v39 }
  0x36   :  { %764 = vmatpush1.bf16.msra.mxu1 %v1565_v3 }
  0x37   :  { %809 = vmatpush1.bf16.msra.mxu0 %v1465_v40  ;;  %765 = vmatprep.subr.bf16.mxu1 %v1569_v6 }
  0x38   :  { %810 = vmatprep.subr.bf16.mxu0 %v1466_v43 }
  0x3a   :  { %766 = vmatpush1.bf16.msra.mxu1 %v1571_v10 }
  0x3b   :  { %811 = vmatpush1.bf16.msra.mxu0 %v1468_v44  ;;  %767 = vmatprep.subr.bf16.mxu1 %v1575_v11 }
  0x3c   :  { %812 = vmatprep.subr.bf16.mxu0 %v1469_v47 }
  0x3e   :  { %768 = vmatpush1.bf16.msra.mxu1 %v1577_v14 }
  0x3f   :  { %813 = vmatpush1.bf16.msra.mxu0 %v1471_v48  ;;  %769 = vmatprep.subr.bf16.mxu1 %v1581_v15 }
  0x40   :  { %823 = vmatprep.subr.bf16.mxu0 %v1476_v51 }
  0x42   :  { %815 = vmatmul.mubr.bf16.vlgmr.msra.gmra.mrb[0].mxu0 %v1214_v54  ;;  %770 = vmatpush1.bf16.msra.mxu1 %v1583_v19 }
  0x43   :  { %824 = vmatpush1.bf16.msra.mxu0 %v1474_v52  ;;  %855 = vmatprep.mubr.bf16.mxu0 %v1217_v58 }
  0x44   :  { %825 = vmatprep.subr.bf16.mxu0 %v1479_v57  ;;  %771 = vmatprep.subr.bf16.mxu1 %v1587_v20 }
  0x46   :  { %772 = vmatpush1.bf16.msra.mxu1 %v1589_v21 }
  0x47   :  { %826 = vmatpush1.bf16.msra.mxu0 %v1477_v59  ;;  %1357 = vmatprep.subr.bf16.mxu1 %v1599_v23 }
  0x48   :  { %827 = vmatprep.subr.bf16.mxu0 %v1482_v62 }
  0x4b   :  { %828 = vmatpush1.bf16.msra.mxu0 %v1480_v63 }
  0x4c   :  { %829 = vmatprep.subr.bf16.mxu0 %v1485_v2 }
  0x4f   :  { %830 = vmatpush1.bf16.msra.mxu0 %v1483_v5 }
  0x50   :  { %831 = vmatprep.subr.bf16.mxu0 %v1488_v8 }
  0x53   :  { %832 = vmatpush1.bf16.msra.mxu0 %v1486_v9 }
  0x54   :  { %833 = vmatprep.subr.bf16.mxu0 %v1491_v12 }
  0x57   :  { %834 = vmatpush1.bf16.msra.mxu0 %v1489_v13 }
  0x58   :  { %835 = vmatprep.subr.bf16.mxu0 %v1494_v16 }
  0x5b   :  { %836 = vmatpush1.bf16.msra.mxu0 %v1492_v17 }
  0x5c   :  { %837 = vmatprep.subr.bf16.mxu0 %v1500_v18 }
  0x5f   :  { %838 = vmatpush1.bf16.msra.mxu0 %v1498_v22 }
  0x60   :  { %839 = vmatprep.subr.bf16.mxu0 %v1506_v24 }
  0x61   :  { %12 = vsyncpa [#allocation3], 0  ;;  %774 = vmatmul.mubr.bf16.vlgmr.msra.gmra.mrb[0].mxu1 %v1212_v27  ;;  %v1602_v30 = vld [vmem:[%s2147_s3 + $0x8] sm:$0xff]   ;;  %v1510_v31 = vld [vmem:[%s2145_s1 + $0x290] ss:$8 sps:$4 sm:$0xff]   ;;  %v1216_v51 = vcombine.low %v1854_v53, %v1854_v53  ;;  %v1647_v56 = vmov 0   ;;  %v146_v16 = vlaneseq }
  0x62   :  { %1358 = vmatpush3.bf16.msra.mxu1 %v1600_v25  ;;  %v1603_v32 = vld [vmem:[%s2147_s3 + $0x50] sm:$0xff]   ;;  %v1518_v33 = vld [vmem:[%s2145_s1 + $0x2a4] ss:$8 sps:$4 sm:$0xff]   ;;  %v1516_v35 = vld [vmem:[%s2145_s1 + $0x2a0] ss:$8 sps:$4 sm:$0xff]   ;;  %v1648_v11 = vmov 0.0  }
  0x63   :  { %840 = vmatpush1.bf16.msra.mxu0 %v1504_v26  ;;  %1359 = vmatprep.subr.bf16.mxu1 %v1601_v28  ;;  %v1604_v34 = vld [vmem:[%s2147_s3 + $0x10] sm:$0xff]   ;;  %v1605_v36 = vld [vmem:[%s2147_s3 + $0x58] sm:$0xff]   ;;  %v1607_v40 = vld [vmem:[%s2147_s3 + $0x60] sm:$0xff]   ;;  %v147_v17 = vshrl.u32 %v146_v16, 7  ;;  %vm1649_vm0 = vmmov 0  }
  0x64   :  { %841 = vmatprep.subr.bf16.mxu0 %v1512_v29  ;;  %v1524_v37 = vld [vmem:[%s2145_s1 + $0x2b4] ss:$8 sps:$4 sm:$0xff]   ;;  %v1522_v39 = vld [vmem:[%s2145_s1 + $0x2b0] ss:$8 sps:$4 sm:$0xff]   ;;  %v1530_v41 = vld [vmem:[%s2145_s1 + $0x2c4] ss:$8 sps:$4 sm:$0xff]  }
  0x65   :  { %v1606_v38 = vld [vmem:[%s2147_s3 + $0x18] sm:$0xff]   ;;  %v1608_v42 = vld [vmem:[%s2147_s3 + $0x20] sm:$0xff]   ;;  %v1609_v5 = vld [vmem:[%s2147_s3 + $0x68] sm:$0xff]   ;;  %v148_v18 = vsub.s32 0, %v147_v17  ;;  %v152_v20 = vsub.s32 1, %v147_v17 }
  0x66   :  { %1360 = vmatpush3.bf16.msra.mxu1 %v1602_v30  ;;  %v1528_v43 = vld [vmem:[%s2145_s1 + $0x2c0] ss:$8 sps:$4 sm:$0xff]   ;;  %v1536_v44 = vld [vmem:[%s2145_s1 + $0x2d4] ss:$8 sps:$4 sm:$0xff]   ;;  %v1534_v45 = vld [vmem:[%s2145_s1 + $0x2d0] ss:$8 sps:$4 sm:$0xff]  }
  0x67   :  { %842 = vmatpush1.bf16.msra.mxu0 %v1510_v31  ;;  %1361 = vmatprep.subr.bf16.mxu1 %v1603_v32  ;;  %v1542_v46 = vld [vmem:[%s2145_s1 + $0x2e4] ss:$8 sps:$4 sm:$0xff]   ;;  %v1540_v47 = vld [vmem:[%s2145_s1 + $0x2e0] ss:$8 sps:$4 sm:$0xff]   ;;  %v1548_v48 = vld [vmem:[%s2145_s1 + $0x2f4] ss:$8 sps:$4 sm:$0xff]  }
  0x68   :  { %843 = vmatprep.subr.bf16.mxu0 %v1518_v33  ;;  %v1546_v49 = vld [vmem:[%s2145_s1 + $0x2f0] ss:$8 sps:$4 sm:$0xff]   ;;  %v1556_v50 = vld [vmem:[%s2145_s1 + $0x304] ss:$8 sps:$4 sm:$0xff]   ;;  %v1554_v52 = vld [vmem:[%s2145_s1 + $0x300] ss:$8 sps:$4 sm:$0xff]  }
  0x69   :  { %v1562_v54 = vld [vmem:[%s2145_s1 + $0x314] ss:$8 sps:$4 sm:$0xff]   ;;  %v1560_v55 = vld [vmem:[%s2145_s1 + $0x310] ss:$8 sps:$4 sm:$0xff]   ;;  %v1568_v53 = vld [vmem:[%s2145_s1 + $0x324] ss:$8 sps:$4 sm:$0xff]  }
  0x6a   :  { %1362 = vmatpush3.bf16.msra.mxu1 %v1604_v34  ;;  %v1566_v57 = vld [vmem:[%s2145_s1 + $0x320] ss:$8 sps:$4 sm:$0xff]   ;;  %v1574_v58 = vld [vmem:[%s2145_s1 + $0x334] ss:$8 sps:$4 sm:$0xff]   ;;  %v1572_v59 = vld [vmem:[%s2145_s1 + $0x330] ss:$8 sps:$4 sm:$0xff]  }
  0x6b   :  { %844 = vmatpush1.bf16.msra.mxu0 %v1516_v35  ;;  %1363 = vmatprep.subr.bf16.mxu1 %v1605_v36  ;;  %v1580_v60 = vld [vmem:[%s2145_s1 + $0x344] ss:$8 sps:$4 sm:$0xff]   ;;  %v1578_v61 = vld [vmem:[%s2145_s1 + $0x340] ss:$8 sps:$4 sm:$0xff]   ;;  %v1586_v62 = vld [vmem:[%s2145_s1 + $0x354] ss:$8 sps:$4 sm:$0xff]  }
  0x6c   :  { %845 = vmatprep.subr.bf16.mxu0 %v1524_v37  ;;  %v1584_v63 = vld [vmem:[%s2145_s1 + $0x350] ss:$8 sps:$4 sm:$0xff]   ;;  %v1592_v0 = vld [vmem:[%s2145_s1 + $0x364] ss:$8 sps:$4 sm:$0xff]   ;;  %v1590_v1 = vld [vmem:[%s2145_s1 + $0x360] ss:$8 sps:$4 sm:$0xff]  }
  0x6d   :  { %v1597_v2 = vld [vmem:[%s2145_s1 + $0x374] ss:$8 sps:$4 sm:$0xff]   ;;  %v1595_v3 = vld [vmem:[%s2145_s1 + $0x370] ss:$8 sps:$4 sm:$0xff]   ;;  %v1610_v6 = vld [vmem:[%s2147_s3 + $0x28] sm:$0xff]  }
  0x6e   :  { %1364 = vmatpush3.bf16.msra.mxu1 %v1606_v38  ;;  %v1598_v4 = vld [vmem:[%s2144_s0 + $0x18] ss:$0 sps:$4 sm:$0xff]   ;;  %v1611_v7 = vld [vmem:[%s2147_s3 + $0x70] sm:$0xff]   ;;  %v144_v19 = vld [vmem:[%s2146_s2] sm:$0x3] }
  0x6f   :  { %846 = vmatpush1.bf16.msra.mxu0 %v1522_v39  ;;  %1365 = vmatprep.subr.bf16.mxu1 %v1607_v40  ;;  %v1612_v8 = vld [vmem:[%s2147_s3 + $0x30] sm:$0xff]   ;;  %v1613_v9 = vld [vmem:[%s2147_s3 + $0x78] sm:$0xff]   ;;  %v149_v21 = vrot.slane %v144_v19, %v148_v18  ;;  %v153_v22 = vrot.slane %v144_v19, %v152_v20  ;;  %v1615_v34 = vld [vmem:[%s2149_s5] sm:$0xff]  }
  0x70   :  { %847 = vmatprep.subr.bf16.mxu0 %v1530_v41  ;;  %v1614_v10 = vld [vmem:[%s2147_s3 + $0x38] sm:$0xff]   ;;  %v1616_v36 = vld [vmem:[%s2149_s5 + $0x8] sm:$0xff]   ;;  %v1617_v37 = vld [vmem:[%s2149_s5 + $0x10] sm:$0xff]  }
  0x71   :  { %v1618_v38 = vld [vmem:[%s2149_s5 + $0x18] sm:$0xff]   ;;  %v1619_v39 = vld [vmem:[%s2149_s5 + $0x20] sm:$0xff]   ;;  %v1620_v40 = vld [vmem:[%s2149_s5 + $0x28] sm:$0xff]  }
  0x72   :  { %1366 = vmatpush3.bf16.msra.mxu1 %v1608_v42  ;;  %v1621_v41 = vld [vmem:[%s2149_s5 + $0x30] sm:$0xff]   ;;  %v1622_v42 = vld [vmem:[%s2149_s5 + $0x38] sm:$0xff]   ;;  %s1650_s5 = smov [#allocation2]  }
  0x73   :  { %848 = vmatpush1.bf16.msra.mxu0 %v1528_v43  ;;  %1367 = vmatprep.subr.bf16.mxu1 %v1609_v5  ;;  %s1204_s29 = sshll.u32 %s1650_s5, 4  ;;  %s1205_s29 = int_to_ptr.vmem [resolvable:$true] %s1204_s29 }
  0x74   :  { %849 = vmatprep.subr.bf16.mxu0 %v1536_v44  ;;  %v1331_v44 = vld [vmem:[%s2148_s4] ss:$0 sm:$0xff]  ;;  %s1623_s4 = scalar_lea.vmem %s1205_s29, 128  ;;  %p1628_p1 = scmp.lt.s32.totalorder %s1205_s29, %s1205_s29 }
  0x75   :  { %p1624_p0 = scmp.ne.s32.totalorder %s1205_s29, %s1623_s4  ;;  %p1629_p2 = scmp.lt.s32.totalorder %s1623_s4, %s1623_s4 }
  0x76   :  { %1368 = vmatpush3.bf16.msra.mxu1 %v1610_v6 }
  0x77   :  { %850 = vmatpush1.bf16.msra.mxu0 %v1534_v45  ;;  %1369 = vmatprep.subr.bf16.mxu1 %v1611_v7  ;;  %p1630_p3 = por %p1629_p2, %p1628_p1 }
  0x78   :  { %851 = vmatprep.subr.bf16.mxu0 %v1542_v46 }
  0x79   :  { %p1631_p4 = pnand %p1630_p3, %p1624_p0 }
  0x7a   :  { %1370 = vmatpush3.bf16.msra.mxu1 %v1612_v8 }
  0x7b   :  { %852 = vmatpush1.bf16.msra.mxu0 %v1540_v47  ;;  %1371 = vmatprep.subr.bf16.mxu1 %v1613_v9 }
  0x7c   :  { %853 = vmatprep.subr.bf16.mxu0 %v1548_v48 }
  0x7e   :  { %1372 = vmatpush3.bf16.msra.mxu1 %v1614_v10 }
  0x7f   :  { %854 = vmatpush1.bf16.msra.mxu0 %v1546_v49  ;;  %1388 = vmatprep.subr.bf16.mxu1 %v1648_v11 }
  0x80   :  { %864 = vmatprep.subr.bf16.mxu0 %v1556_v50 }
  0x82   :  { %856 = vmatmul.mubr.bf16.vlgmr.msra.gmra.mrb[0].mxu0 %v1216_v51 }
  0x83   :  { %865 = vmatpush1.bf16.msra.mxu0 %v1554_v52  ;;  %896 = vmatprep.mubr.bf16.mxu0 %v1647_v56  ;;  %v1348_v52 = vld [vmem:[%s2150_s6] ss:$0 sm:$0xff] }
  0x84   :  { %866 = vmatprep.subr.bf16.mxu0 %v1562_v54 }
  0x87   :  { %867 = vmatpush1.bf16.msra.mxu0 %v1560_v55 }
  0x88   :  { %868 = vmatprep.subr.bf16.mxu0 %v1568_v53 }
  0x8b   :  { %869 = vmatpush1.bf16.msra.mxu0 %v1566_v57 }
  0x8c   :  { %870 = vmatprep.subr.bf16.mxu0 %v1574_v58 }
  0x8f   :  { %871 = vmatpush1.bf16.msra.mxu0 %v1572_v59 }
  0x90   :  { %872 = vmatprep.subr.bf16.mxu0 %v1580_v60 }
  0x93   :  { %873 = vmatpush1.bf16.msra.mxu0 %v1578_v61 }
  0x94   :  { %874 = vmatprep.subr.bf16.mxu0 %v1586_v62 }
  0x97   :  { %875 = vmatpush1.bf16.msra.mxu0 %v1584_v63 }
  0x98   :  { %876 = vmatprep.subr.bf16.mxu0 %v1592_v0 }
  0x9b   :  { %877 = vmatpush1.bf16.msra.mxu0 %v1590_v1 }
  0x9c   :  { %878 = vmatprep.subr.bf16.mxu0 %v1597_v2 }
  0x9f   :  { %879 = vmatpush1.bf16.msra.mxu0 %v1595_v3 }
  0xa2   :  { %897 = vmatmul.mubr.bf16.vlgmr.msra.gmra.mrb[0].mxu0 %v1598_v4 }
 0x134   :  { %v775_v12 = vpop.f32.mrb[0].mxu1 }
 0x135   :  { %v777_v13 = vpop.f32.mrb[1].mxu1  ;;  %v776_v23 = vadd.f32 %v775_v12, %v149_v21 }
 0x136   :  { %v779_v14 = vpop.f32.mrb[2].mxu1  ;;  %v778_v24 = vadd.f32 %v777_v13, %v153_v22 }
 0x137   :  { %v780_v15 = vpop.f32.mrb[3].mxu1 }
 0x175   :  { %v898_v25 = vpop.f32.mrb[0].mxu0 }
 0x176   :  { %v1409_v26 = vadd.f32 %v898_v25, %v776_v23  ;;  %v900_v27 = vpop.f32.mrb[1].mxu0 }
 0x177   :  { %v1411_v28 = vadd.f32 %v900_v27, %v778_v24  ;;  %v902_v29 = vpop.f32.mrb[2].mxu0 }
 0x178   :  { %v905_v30 = vmax.f32 %v1409_v26, 0.0  ;;  %v903_v31 = vpop.f32.mrb[3].mxu0 }
 0x179   :  { %v906_v32 = vmax.f32 %v1411_v28, 0.0 }
 0x17a   :  { %v907_v35 = vpack.c.bf16 %v905_v30, %v905_v30 }
 0x17b   :  { %v908_v33 = vpack.c.bf16 %v906_v32, %v906_v32 }
 0x17d   :  { %1076 = vmatprep.mubr.bf16.mxu1 %v908_v33 }
 0x17e   :  { %1077 = vmatmul.mubr.bf16.vlgmr.msra.gmra.mrb[4].mxu1 %v907_v35 }
 0x17f   :  { %1389 = vmatpush3.bf16.msra.mxu1 %v1615_v34  ;;  %1404 = vmatprep.mubr.msk.bf16.mxu1 %vm1649_vm0, %v1648_v11 }
 0x180   :  { %1390 = vmatprep.subr.bf16.mxu1 %v1648_v11 }
 0x183   :  { %1391 = vmatpush3.bf16.msra.mxu1 %v1616_v36 }
 0x184   :  { %1392 = vmatprep.subr.bf16.mxu1 %v1648_v11 }
 0x187   :  { %1393 = vmatpush3.bf16.msra.mxu1 %v1617_v37 }
 0x188   :  { %1394 = vmatprep.subr.bf16.mxu1 %v1648_v11 }
 0x18b   :  { %1395 = vmatpush3.bf16.msra.mxu1 %v1618_v38 }
 0x18c   :  { %1396 = vmatprep.subr.bf16.mxu1 %v1648_v11 }
 0x18f   :  { %1397 = vmatpush3.bf16.msra.mxu1 %v1619_v39 }
 0x190   :  { %1398 = vmatprep.subr.bf16.mxu1 %v1648_v11 }
 0x193   :  { %1399 = vmatpush3.bf16.msra.mxu1 %v1620_v40 }
 0x194   :  { %1400 = vmatprep.subr.bf16.mxu1 %v1648_v11 }
 0x197   :  { %1401 = vmatpush3.bf16.msra.mxu1 %v1621_v41 }
 0x198   :  { %1402 = vmatprep.subr.bf16.mxu1 %v1648_v11 }
 0x19b   :  { %1403 = vmatpush3.bf16.msra.mxu1 %v1622_v42 }
 0x251   :  { %v1373_v43 = vpop.f32.mrb[4].mxu1 }
 0x252   :  { %v1374_v45 = vpop.f32.mrb[5].mxu1 }
 0x253   :  { %v1375_v46 = vadd.f32 %v1374_v45, %v1373_v43  ;;  %v1376_v47 = vpop.f32.mrb[6].mxu1 }
 0x254   :  { %v1377_v48 = vpop.f32.mrb[7].mxu1 }
 0x255   :  { %v1079_v49 = vadd.f32 %v1375_v46, %v1331_v44 }
 0x257   :  { %v1084_v50 = vmax.f32 %v1079_v49, 0.0 }
 0x259   :  { %v1085_v51 = vpack.c.bf16 %v1084_v50, %v1084_v50 }
 0x25b   :  { %1405 = vmatmul.mubr.bf16.vlgmr.msra.gmra.mrb[8].mxu1 %v1085_v51 }
 0x32e   :  { %v1191_v54 = vpop.f32.mrb[8].mxu1 }
 0x32f   :  { %v1192_v55 = vadd.f32 %v1348_v52, %v1191_v54  ;;  %v1406_v56 = vpop.f32.mrb[9].mxu1 }
 0x330   :  { %v1194_v53 = vpop.f32.mrb[10].mxu1 }
 0x331   :  { %1197 = vst [vmem:[#allocation2] sm:$0xff] %v1192_v55  ;;  %v1407_v57 = vpop.f32.mrb[11].mxu1 }
 0x332   :  { %1634 = shalt.err (!%p1631_p4)
}
 0x333   :  { %s1635_s6 = scalar_lea.hbm %s2151_s7, 128 }
 0x334   :  { %p1636_p5 = scmp.ne.s32.totalorder %s2151_s7, %s1635_s6  ;;  %p1639_p6 = scmp.lt.u32.totalorder %s1635_s6, %s2151_s7 }
 0x336   :  { %p1641_p7 = pnand %p1639_p6, %p1636_p5 }
 0x338   :  { %1644 = shalt.err (!%p1641_p7)
}
 0x339   :  { %1207 = dma.vmem_to_hbm [thread:$0]  %s1205_s29, 128, %s2151_s7, [#allocation3]  }
 0x33a   :  { %1645 = dma.done.wait [#allocation3], 128  }
 0x33b   :  { %1646 = vsyncadd [#allocation3], 4294967168 }
 0x33c   :  { %1211 = vsyncpa [#allocation3], 1 }

</bundles_post_ra>
